<compile_context>
chip_gen: v5e
topology: v5e:2x2
jax: 0.10.0
libtpu: 0.0.40
codegen_flags: <defaults>
</compile_context>

<pallas_src>
import jax
import jax.numpy as jnp
from jax import lax
from jax.experimental import pallas as pl
from jax.experimental.pallas import tpu as pltpu

NUM_CLASSES = 10
LANE = 128              # class dimension padded to one full lane width
NEG_BIG = -1e30         # large finite negative for padded-class logits


def nima_head_kernel(x_ref, w_ref, b_ref, o_ref):
    # x_ref: (TB, C, S)   bf16 features, S = H*W (NCHW layout, spatial last)
    # w_ref: (C, LANE)    f32 fc weight^T, pre-scaled by 1/S, zero beyond class 10
    # b_ref: (1, LANE)    f32 fc bias, NEG_BIG beyond class 10
    # o_ref: (TB, LANE)   f32 softmax probabilities (valid in lanes [0, 10))
    TB, C, S = x_ref.shape
    lane_n = w_ref.shape[1]

    # Chunk the channel (sublane) axis to bound live vreg ranges.
    CK = 256 if C % 256 == 0 else C
    n_chunks = C // CK

    def body(ci, acc):
        c0 = pl.multiple_of(ci * CK, CK)
        chunk = x_ref[:, pl.ds(c0, CK), :].astype(jnp.float32)   # (TB, CK, S)
        pooled = jnp.sum(chunk, axis=-1)                         # (TB, CK); 1/S folded in w
        wk = w_ref[pl.ds(c0, CK), :]                             # (CK, LANE)
        return acc + jnp.dot(pooled, wk, preferred_element_type=jnp.float32)

    logits = lax.fori_loop(0, n_chunks, body,
                           jnp.zeros((TB, lane_n), jnp.float32)) + b_ref[...]

    # Softmax(dim=1), numerically stable; padded lanes give exp(~-1e30) == 0.
    m = jnp.max(logits, axis=-1, keepdims=True)
    e = jnp.exp(logits - m)
    denom = jnp.sum(e, axis=-1, keepdims=True)
    o_ref[...] = e * pl.reciprocal(denom, approx=True)


def nima_forward(features_nchw, fc_weight, fc_bias, *, block_b=32):
    """features_nchw: (B, C, H, W) pre-fc ResNet50 feature map (PyTorch layout).
    fc_weight: (10, C) as in nn.Linear;  fc_bias: (10,)."""
    B, C, H, W = features_nchw.shape
    HW = H * W

    # Free reshape (row-major NCHW) — no transpose, no extra HBM pass; bf16
    # halves the HBM read bytes of this memory-bound kernel.
    x = features_nchw.reshape(B, C, HW).astype(jnp.bfloat16)

    TB = min(block_b, B)
    Bp = -(-B // TB) * TB
    if Bp != B:
        x = jnp.pad(x, ((0, Bp - B), (0, 0), (0, 0)))

    # Fold the 1/(H*W) mean into the weights; pad classes to 128 lanes.
    w_pad = jnp.zeros((C, LANE), jnp.float32).at[:, :NUM_CLASSES].set(
        fc_weight.T.astype(jnp.float32) * (1.0 / HW))
    b_pad = jnp.full((1, LANE), NEG_BIG, jnp.float32).at[0, :NUM_CLASSES].set(
        fc_bias.astype(jnp.float32))

    out_padded = pl.pallas_call(
        nima_head_kernel,
        out_shape=jax.ShapeDtypeStruct((Bp, LANE), jnp.float32),
        grid=(Bp // TB,),
        in_specs=[
            pl.BlockSpec((TB, C, HW), lambda i: (i, 0, 0)),   # features (pipelined)
            pl.BlockSpec((C, LANE), lambda i: (0, 0)),        # weight (resident)
            pl.BlockSpec((1, LANE), lambda i: (0, 0)),        # bias (resident)
        ],
        out_specs=pl.BlockSpec((TB, LANE), lambda i: (i, 0)),
        compiler_params=pltpu.CompilerParams(
            dimension_semantics=("parallel",),
            vmem_limit_bytes=48 * 1024 * 1024,
        ),
    )(x, w_pad, b_pad)

    return out_padded[:B, :NUM_CLASSES]


if __name__ == "__main__":
    B, C, H, W = 2, 2048, 7, 7  # resnet50 pre-fc feature map shape

    key = jax.random.PRNGKey(0)
    k_feat, k_w, k_b = jax.random.split(key, 3)

    features = jax.random.normal(k_feat, (B, C, H, W), dtype=jnp.float32)

    # Deterministic nn.Linear-style init: U(-1/sqrt(C), 1/sqrt(C)).
    bound = 1.0 / jnp.sqrt(jnp.float32(C))
    fc_weight = jax.random.uniform(k_w, (NUM_CLASSES, C), jnp.float32,
                                   minval=-bound, maxval=bound)
    fc_bias = jax.random.uniform(k_b, (NUM_CLASSES,), jnp.float32,
                                 minval=-bound, maxval=bound)

    probs = jax.block_until_ready(nima_forward(features, fc_weight, fc_bias))

    # Pure-JAX reference of the same head (on the same bf16-quantized features).
    feat_bf = features.astype(jnp.bfloat16).astype(jnp.float32)
    pooled_ref = jnp.mean(feat_bf, axis=(2, 3))                 # (B, C)
    logits_ref = pooled_ref @ fc_weight.T + fc_bias
    probs_ref = jax.nn.softmax(logits_ref, axis=1)

    assert probs.shape == (B, NUM_CLASSES)
    assert jnp.allclose(jnp.sum(probs, axis=1), 1.0, atol=5e-3)
    assert jnp.allclose(probs, probs_ref, atol=2e-3, rtol=2e-3)

    print("KERNEL_OK")
</pallas_src>

<mosaic_0001>
module attributes {stable_mosaic.version = 11 : i64} {
  func.func @nima_head_kernel(%arg0: i32, %arg1: memref<2x2048x49xbf16, #tpu.memory_space<vmem>>, %arg2: memref<2048x128xf32, #tpu.memory_space<vmem>>, %arg3: memref<1x128xf32, #tpu.memory_space<vmem>>, %arg4: memref<2x128xf32, #tpu.memory_space<vmem>>) attributes {dimension_semantics = [#tpu.dimension_semantics<parallel>], iteration_bounds = array<i64: 1>, scalar_prefetch = 0 : i64, scratch_operands = 0 : i64, tpu.core_type = #tpu.core_type<tc>, window_params = [{transform_indices = @transform_0, window_bounds = array<i64: 2, 2048, 49>}, {pipeline_mode = #tpu.pipeline_mode<synchronous>, transform_indices = @transform_1, window_bounds = array<i64: 2048, 128>}, {pipeline_mode = #tpu.pipeline_mode<synchronous>, transform_indices = @transform_2, window_bounds = array<i64: 1, 128>}, {transform_indices = @transform_3, window_bounds = array<i64: 2, 128>}]} {
    %cst = arith.constant 0.000000e+00 : f32
    %0 = vector.broadcast %cst : f32 to vector<2x128xf32>
    %c0_i32 = arith.constant 0 : i32
    %c8_i32 = arith.constant 8 : i32
    %1 = arith.addi %c0_i32, %c8_i32 : i32
    %c1_i32 = arith.constant 1 : i32
    %2 = scf.for %arg5 = %c0_i32 to %1 step %c1_i32 iter_args(%arg6 = %0) -> (vector<2x128xf32>)  : i32 {
      %c256_i32 = arith.constant 256 : i32
      %17 = arith.muli %arg5, %c256_i32 : i32
      %18 = tpu.assume_multiple %17, 256 : i32
      %c0_6 = arith.constant 0 : index
      %19 = arith.index_cast %18 : i32 to index
      %c0_7 = arith.constant 0 : index
      %20 = vector.load %arg1[%c0_6, %19, %c0_7] : memref<2x2048x49xbf16, #tpu.memory_space<vmem>>, vector<2x256x49xbf16>
      %21 = arith.extf %20 : vector<2x256x49xbf16> to vector<2x256x49xf32>
      %cst_8 = arith.constant dense<0.000000e+00> : vector<2x256xf32>
      %22 = vector.multi_reduction <add>, %21, %cst_8 [2] : vector<2x256x49xf32> to vector<2x256xf32>
      %23 = arith.index_cast %18 : i32 to index
      %c0_9 = arith.constant 0 : index
      %24 = vector.load %arg2[%23, %c0_9] : memref<2048x128xf32, #tpu.memory_space<vmem>>, vector<256x128xf32>
      %cst_10 = arith.constant dense<0.000000e+00> : vector<2x128xf32>
      %25 = tpu.matmul %22, %24, %cst_10 {dimension_numbers = #tpu.dot_dimension_numbers<[1], [0], [0], [1], [0, 0, 1, 1], [], []>} : vector<2x256xf32>, vector<256x128xf32>, vector<2x128xf32> -> vector<2x128xf32>
      %26 = arith.addf %arg6, %25 : vector<2x128xf32>
      scf.yield %26 : vector<2x128xf32>
    }
    %c8_i32_0 = arith.constant 8 : i32
    %c0 = arith.constant 0 : index
    %c0_1 = arith.constant 0 : index
    %3 = vector.load %arg3[%c0, %c0_1] : memref<1x128xf32, #tpu.memory_space<vmem>>, vector<1x128xf32>
    %4 = vector.broadcast %3 : vector<1x128xf32> to vector<2x128xf32>
    %5 = arith.addf %2, %4 : vector<2x128xf32>
    %cst_2 = arith.constant dense<0xFF800000> : vector<2xf32>
    %6 = vector.multi_reduction <maximumf>, %5, %cst_2 [1] : vector<2x128xf32> to vector<2xf32>
    %7 = vector.shape_cast %6 : vector<2xf32> to vector<2x1xf32>
    %8 = vector.broadcast %7 : vector<2x1xf32> to vector<2x128xf32>
    %9 = arith.subf %5, %8 : vector<2x128xf32>
    %10 = math.exp %9 : vector<2x128xf32>
    %cst_3 = arith.constant dense<0.000000e+00> : vector<2xf32>
    %11 = vector.multi_reduction <add>, %10, %cst_3 [1] : vector<2x128xf32> to vector<2xf32>
    %12 = vector.shape_cast %11 : vector<2xf32> to vector<2x1xf32>
    %13 = tpu.reciprocal %12 {approx = true} : vector<2x1xf32> -> vector<2x1xf32>
    %14 = vector.broadcast %13 : vector<2x1xf32> to vector<2x128xf32>
    %15 = arith.mulf %10, %14 : vector<2x128xf32>
    %c0_4 = arith.constant 0 : index
    %c0_5 = arith.constant 0 : index
    %16 = vector.load %arg4[%c0_4, %c0_5] : memref<2x128xf32, #tpu.memory_space<vmem>>, vector<2x128xf32>
    tpu.vector_store %arg4[%c0_4, %c0_5], %15 {strides = array<i32>} : memref<2x128xf32, #tpu.memory_space<vmem>>, vector<2x128xf32>,
    return
  }
  func.func @transform_0(%arg0: i32) -> (i32, i32, i32) {
    %c0_i32 = arith.constant 0 : i32
    %c0_i32_0 = arith.constant 0 : i32
    %c0_i32_1 = arith.constant 0 : i32
    return %arg0, %c0_i32, %c0_i32_0 : i32, i32, i32
  }
  func.func @transform_1(%arg0: i32) -> (i32, i32) {
    %c0_i32 = arith.constant 0 : i32
    %c0_i32_0 = arith.constant 0 : i32
    %c0_i32_1 = arith.constant 0 : i32
    return %c0_i32, %c0_i32_0 : i32, i32
  }
  func.func @transform_2(%arg0: i32) -> (i32, i32) {
    %c0_i32 = arith.constant 0 : i32
    %c0_i32_0 = arith.constant 0 : i32
    %c0_i32_1 = arith.constant 0 : i32
    return %c0_i32, %c0_i32_0 : i32, i32
  }
  func.func @transform_3(%arg0: i32) -> (i32, i32) {
    %c0_i32 = arith.constant 0 : i32
    %c0_i32_0 = arith.constant 0 : i32
    return %arg0, %c0_i32 : i32, i32
  }
}

</mosaic_0001>

<bundles_post_ra>
// kernel: tpu_custom_call.1
= control target key start
LH: loop header
LB: loop body
LE: loop exit
PB: predicated region body
PF: predicated region fallthrough
CT: control target
= control target key end

     0   :  { %8 = vsyncpa [#allocation3], 0  ;;  %v939_v0 = vmov 0.0   ;;  %s941_s12 = smov 0   ;;  %s1308_s0 = inlined_call_operand.vmem [shape: bf16[2,2048,49], index: 0, kind: input, shape index: {}]   ;;  %s1309_s1 = inlined_call_operand.vmem [shape: f32[2048,128], index: 1, kind: input, shape index: {}]   ;;  %s1310_s2 = inlined_call_operand.vmem [shape: f32[1,128], index: 2, kind: input, shape index: {}]   ;;  %s1311_s3 = inlined_call_operand.hbm [shape: f32[2,128], index: 3, kind: output, shape index: {}]  }
   0x1 LB: > { %s693_s13 = sshll.u32 %s916_s12, 8  ;;  %vm155_vm0 = vcmask 400384   ;;  %vm450_vm1 = vcmask 130112   ;;  %vm454_vm2 = vcmask 195712   ;;  %vm458_vm3 = vcmask 261312   ;;  %s20_s12 = sadd.s32 1, %s916_s12   ;;  %s916_s12 = sphi %s941_s12, %s20_s12   ;;  %v912_v0 = vphi %v939_v0, %v1312_v0  }
   0x2   : > { %s23_s14 = sshra.s32 %s693_s13, 3  ;;  %vm462_vm4 = vcmask 326912   ;;  %vm466_vm5 = vcmask 392512   ;;  %vm470_vm6 = vcmask 458112   ;;  %vm474_vm7 = vcmask 523712   ;;  %s1128_s21 = scalar_lea.vmem %s1309_s1, %s693_s13 }
   0x3   : > { %s694_s15 = sshll.u32 %s23_s14, 2  ;;  %vm478_vm8 = vcmask 589312   ;;  %vm482_vm9 = vcmask 654912   ;;  %vm486_vm10 = vcmask 720512   ;;  %vm490_vm11 = vcmask 786112   ;;  %p17_p0 = scmp.ge.s32.totalorder %s20_s12, 8  }
   0x4   : > { %s955_s18 = scalar_lea.vmem %s1308_s0, %s694_s15  ;;  %vm494_vm12 = vcmask 851712   ;;  %vm498_vm13 = vcmask 917312   ;;  %vm502_vm14 = vcmask 982912   ;;  %vm506_vm15 = vcmask 1048512   ;;  %s918_s24 = smov (%p17_p0), [#allocation2]  }
   0x5   : > { %v838_v1 = vld [vmem:[%s955_s18 + $0x400] sm:$0xff]   ;;  %v823_v17 = vld [vmem:[%s955_s18 + $0x8] sm:$0xff]   ;;  %v824_v39 = vld [vmem:[%s955_s18 + $0x10] sm:$0xff]   ;;  %s670_s25 = sshll.u32 (%p17_p0), %s918_s24, 4  ;;  %s672_s1 = sshll.u32 (%p17_p0), %s1311_s3, 4  ;;  %s671_s25 = int_to_ptr.vmem [resolvable:$true] %s670_s25  ;;  %s673_s1 = int_to_ptr.hbm [resolvable:$true] %s672_s1 }
   0x6   : > { %v830_v2 = vld [vmem:[%s955_s18 + $0x40] sm:$0xff]   ;;  %v761_v4 = vunpack.c.l.bf16 %v838_v1  ;;  %v762_v10 = vunpack.c.h.bf16 %v838_v1  ;;  %v701_v19 = vunpack.c.l.bf16 %v823_v17  ;;  %v839_v24 = vld [vmem:[%s955_s18 + $0x408] sm:$0xff]   ;;  %v702_v35 = vunpack.c.h.bf16 %v823_v17  ;;  %v832_v40 = vld [vmem:[%s955_s18 + $0x50] sm:$0xff]  }
   0x7   : > { %v696_v3 = vld [vmem:[%s955_s18] sm:$0xff]   ;;  %v729_v5 = vunpack.c.l.bf16 %v830_v2  ;;  %v730_v11 = vunpack.c.h.bf16 %v830_v2  ;;  %v847_v25 = vld [vmem:[%s955_s18 + $0x448] sm:$0xff]   ;;  %v765_v27 = vunpack.c.l.bf16 %v839_v24  ;;  %v766_v34 = vunpack.c.h.bf16 %v839_v24  ;;  %v848_v47 = vld [vmem:[%s955_s18 + $0x450] sm:$0xff]  }
   0x8   : > { %v697_v6 = vunpack.c.l.bf16 %v696_v3  ;;  %v252_v7 = vsel %vm155_vm0, %v761_v4, 0.0  ;;  %v698_v12 = vunpack.c.h.bf16 %v696_v3  ;;  %v255_v13 = vsel %vm155_vm0, %v762_v10, 0.0  ;;  %v846_v16 = vld [vmem:[%s955_s18 + $0x440] sm:$0xff]   ;;  %v831_v26 = vld [vmem:[%s955_s18 + $0x48] sm:$0xff]   ;;  %v840_v48 = vld [vmem:[%s955_s18 + $0x410] sm:$0xff]  }
   0x9   : > { %v204_v8 = vsel %vm155_vm0, %v729_v5, 0.0  ;;  %253 = vadd.xlane.f32.xlu2 %v252_v7  ;;  %v207_v14 = vsel %vm155_vm0, %v730_v11, 0.0  ;;  %v794_v18 = vunpack.c.h.bf16 %v846_v16  ;;  %v793_v20 = vunpack.c.l.bf16 %v846_v16  ;;  %v833_v61 = vld [vmem:[%s955_s18 + $0x58] sm:$0xff]  }
   0xa   : > { %v156_v9 = vsel %vm155_vm0, %v697_v6, 0.0  ;;  %205 = vadd.xlane.f32.xlu1 %v204_v8  ;;  %v159_v15 = vsel %vm155_vm0, %v698_v12, 0.0  ;;  %v162_v22 = vsel %vm155_vm0, %v701_v19, 0.0  ;;  %v797_v28 = vunpack.c.l.bf16 %v847_v25  ;;  %v841_v62 = vld [vmem:[%s955_s18 + $0x418] sm:$0xff]  }
   0xb   : > { %157 = vadd.xlane.f32.xlu0 %v156_v9  ;;  %v303_v21 = vsel %vm155_vm0, %v794_v18, 0.0  ;;  %v300_v23 = vsel %vm155_vm0, %v793_v20, 0.0  ;;  %v733_v29 = vunpack.c.l.bf16 %v831_v26  ;;  %v258_v30 = vsel %vm155_vm0, %v765_v27, 0.0  ;;  %v825_v63 = vld [vmem:[%s955_s18 + $0x18] sm:$0xff]  }
   0xc   : > { %v306_v31 = vsel %vm155_vm0, %v797_v28, 0.0  ;;  %v734_v33 = vunpack.c.h.bf16 %v831_v26  ;;  %v261_v37 = vsel %vm155_vm0, %v766_v34, 0.0  ;;  %v165_v38 = vsel %vm155_vm0, %v702_v35, 0.0  ;;  %v849_v7 = vld [vmem:[%s955_s18 + $0x458] sm:$0xff]  }
   0xd   : > { %v210_v32 = vsel %vm155_vm0, %v733_v29, 0.0  ;;  %v705_v41 = vunpack.c.l.bf16 %v824_v39  ;;  %v737_v42 = vunpack.c.l.bf16 %v832_v40  ;;  %v798_v43 = vunpack.c.h.bf16 %v847_v25 }
   0xe   : > { %v213_v36 = vsel %vm155_vm0, %v734_v33, 0.0  ;;  %v801_v49 = vunpack.c.l.bf16 %v848_v47  ;;  %v706_v50 = vunpack.c.h.bf16 %v824_v39  ;;  %v769_v51 = vunpack.c.l.bf16 %v840_v48 }
   0xf   : > { %v168_v44 = vsel %vm155_vm0, %v705_v41, 0.0  ;;  %v216_v45 = vsel %vm155_vm0, %v737_v42, 0.0  ;;  %v309_v46 = vsel %vm155_vm0, %v798_v43, 0.0  ;;  %v770_v55 = vunpack.c.h.bf16 %v840_v48 }
  0x10   : > { %v312_v52 = vsel %vm155_vm0, %v801_v49, 0.0  ;;  %v171_v53 = vsel %vm155_vm0, %v706_v50, 0.0  ;;  %v264_v54 = vsel %vm155_vm0, %v769_v51, 0.0  ;;  %v802_v56 = vunpack.c.h.bf16 %v848_v47 }
  0x11   : > { %256 = vadd.xlane.f32.xlu2 %v255_v13  ;;  %v738_v57 = vunpack.c.h.bf16 %v832_v40  ;;  %v267_v58 = vsel %vm155_vm0, %v770_v55, 0.0  ;;  %v741_v1 = vunpack.c.l.bf16 %v833_v61  ;;  %v773_v2 = vunpack.c.l.bf16 %v841_v62 }
  0x12   : > { %208 = vadd.xlane.f32.xlu1 %v207_v14  ;;  %v315_v59 = vsel %vm155_vm0, %v802_v56, 0.0  ;;  %v709_v3 = vunpack.c.l.bf16 %v825_v63  ;;  %v710_v8 = vunpack.c.h.bf16 %v825_v63  ;;  %v742_v9 = vunpack.c.h.bf16 %v833_v61  ;;  %v826_v14 = vld [vmem:[%s955_s18 + $0x20] sm:$0xff]   ;;  %v836_v63 = vld [vmem:[%s955_s18 + $0x70] sm:$0xff]  }
  0x13   : > { %160 = vadd.xlane.f32.xlu0 %v159_v15  ;;  %v219_v60 = vsel %vm155_vm0, %v738_v57, 0.0  ;;  %v222_v4 = vsel %vm155_vm0, %v741_v1, 0.0  ;;  %v270_v5 = vsel %vm155_vm0, %v773_v2, 0.0  ;;  %v805_v10 = vunpack.c.l.bf16 %v849_v7  ;;  %v1033_v1 = vld [vmem:[%s955_s18 + $0x430] sm:$0xff]  }
  0x14   : > { %v174_v6 = vsel %vm155_vm0, %v709_v3, 0.0  ;;  %v177_v11 = vsel %vm155_vm0, %v710_v8, 0.0  ;;  %v225_v12 = vsel %vm155_vm0, %v742_v9, 0.0  ;;  %v806_v15 = vunpack.c.h.bf16 %v849_v7  ;;  %v828_v2 = vld [vmem:[%s955_s18 + $0x30] sm:$0xff]  }
  0x15   : > { %v318_v13 = vsel %vm155_vm0, %v805_v10, 0.0  ;;  %v713_v16 = vunpack.c.l.bf16 %v826_v14  ;;  %v774_v17 = vunpack.c.h.bf16 %v841_v62  ;;  %v721_v8 = vunpack.c.l.bf16 %v828_v2 }
  0x16   : > { %v321_v18 = vsel %vm155_vm0, %v806_v15, 0.0 }
  0x17   : > { %v180_v19 = vsel %vm155_vm0, %v713_v16, 0.0  ;;  %v273_v20 = vsel %vm155_vm0, %v774_v17, 0.0 }
  0x19   : > { %163 = vadd.xlane.f32.xlu2 %v162_v22  ;;  %v850_v22 = vld [vmem:[%s955_s18 + $0x460] sm:$0xff]  }
  0x1a   : > { %304 = vadd.xlane.f32.xlu1 %v303_v21  ;;  %v842_v21 = vld [vmem:[%s955_s18 + $0x420] sm:$0xff]   ;;  %v809_v25 = vunpack.c.l.bf16 %v850_v22  ;;  %v810_v40 = vunpack.c.h.bf16 %v850_v22  ;;  %v852_v22 = vld [vmem:[%s955_s18 + $0x470] sm:$0xff]  }
  0x1b   : > { %301 = vadd.xlane.f32.xlu0 %v300_v23  ;;  %v834_v23 = vld [vmem:[%s955_s18 + $0x60] sm:$0xff]   ;;  %v777_v24 = vunpack.c.l.bf16 %v842_v21 }
  0x1c   : > { %v745_v26 = vunpack.c.l.bf16 %v834_v23  ;;  %v324_v28 = vsel %vm155_vm0, %v809_v25, 0.0  ;;  %v327_v43 = vsel %vm155_vm0, %v810_v40, 0.0  ;;  %v754_v25 = vunpack.c.h.bf16 %v836_v63 }
  0x1d   : > { %v276_v27 = vsel %vm155_vm0, %v777_v24, 0.0  ;;  %v722_v24 = vunpack.c.h.bf16 %v828_v2 }
  0x1e   : > { %v228_v29 = vsel %vm155_vm0, %v745_v26, 0.0  ;;  %v817_v26 = vunpack.c.l.bf16 %v852_v22 }
  0x21   : > { %307 = vadd.xlane.f32.xlu2 %v306_v31  ;;  %v778_v31 = vunpack.c.h.bf16 %v842_v21 }
  0x22   : > { %259 = vadd.xlane.f32.xlu1 %v258_v30  ;;  %v746_v30 = vunpack.c.h.bf16 %v834_v23 }
  0x23   : > { %211 = vadd.xlane.f32.xlu0 %v210_v32  ;;  %v714_v32 = vunpack.c.h.bf16 %v826_v14  ;;  %v279_v34 = vsel %vm155_vm0, %v778_v31, 0.0 }
  0x24   : > { %v231_v33 = vsel %vm155_vm0, %v746_v30, 0.0 }
  0x25   : > { %v183_v35 = vsel %vm155_vm0, %v714_v32, 0.0 }
  0x29   : > { %262 = vadd.xlane.f32.xlu2 %v261_v37  ;;  %v835_v37 = vld [vmem:[%s955_s18 + $0x68] sm:$0xff]  }
  0x2a   : > { %214 = vadd.xlane.f32.xlu1 %v213_v36  ;;  %v827_v36 = vld [vmem:[%s955_s18 + $0x28] sm:$0xff]   ;;  %v749_v39 = vunpack.c.l.bf16 %v835_v37  ;;  %v750_v55 = vunpack.c.h.bf16 %v835_v37  ;;  %v829_v37 = vld [vmem:[%s955_s18 + $0x38] sm:$0xff]  }
  0x2b   : > { %166 = vadd.xlane.f32.xlu0 %v165_v38  ;;  %v717_v38 = vunpack.c.l.bf16 %v827_v36  ;;  %v718_v47 = vunpack.c.h.bf16 %v827_v36  ;;  %v336_v36 = vsel %vm155_vm0, %v817_v26, 0.0  ;;  %v725_v40 = vunpack.c.l.bf16 %v829_v37 }
  0x2c   : > { %v234_v42 = vsel %vm155_vm0, %v749_v39, 0.0  ;;  %v237_v62 = vsel %vm155_vm0, %v750_v55, 0.0  ;;  %v818_v39 = vunpack.c.h.bf16 %v852_v22 }
  0x2d   : > { %v186_v41 = vsel %vm155_vm0, %v717_v38, 0.0  ;;  %v189_v50 = vsel %vm155_vm0, %v718_v47, 0.0 }
  0x31   : > { %217 = vadd.xlane.f32.xlu2 %v216_v45  ;;  %v843_v45 = vld [vmem:[%s955_s18 + $0x428] sm:$0xff]  }
  0x32   : > { %169 = vadd.xlane.f32.xlu1 %v168_v44  ;;  %v851_v44 = vld [vmem:[%s955_s18 + $0x468] sm:$0xff]   ;;  %v781_v48 = vunpack.c.l.bf16 %v843_v45 }
  0x33   : > { %310 = vadd.xlane.f32.xlu0 %v309_v46  ;;  %v813_v46 = vunpack.c.l.bf16 %v851_v44 }
  0x34   : > { %v282_v51 = vsel %vm155_vm0, %v781_v48, 0.0  ;;  %v339_v48 = vsel %vm155_vm0, %v818_v39, 0.0 }
  0x35   : > { %v330_v49 = vsel %vm155_vm0, %v813_v46, 0.0 }
  0x39   : > { %172 = vadd.xlane.f32.xlu2 %v171_v53  ;;  %v814_v53 = vunpack.c.h.bf16 %v851_v44 }
  0x3a   : > { %313 = vadd.xlane.f32.xlu1 %v312_v52  ;;  %v782_v52 = vunpack.c.h.bf16 %v843_v45 }
  0x3b   : > { %265 = vadd.xlane.f32.xlu0 %v264_v54  ;;  %v445_v54 = vlaneseq }
  0x3d   : > { %v1028_v61 = vand.u32 127, %v445_v54  ;;  %v853_v54 = vld [vmem:[%s955_s18 + $0x478] sm:$0xff]  }
  0x3f   : > { %v448_v3 = vadd.s32 4294967288, %v1028_v61  ;;  %v452_v23 = vadd.s32 4294967280, %v1028_v61 }
  0x41   : > { %316 = vadd.xlane.f32.xlu2 %v315_v59  ;;  %v285_v59 = vsel %vm155_vm0, %v782_v52, 0.0 }
  0x42   : > { %268 = vadd.xlane.f32.xlu1 %v267_v58 }
  0x43   : > { %220 = vadd.xlane.f32.xlu0 %v219_v60  ;;  %v333_v60 = vsel %vm155_vm0, %v814_v53, 0.0  ;;  %v845_v53 = vld [vmem:[%s955_s18 + $0x438] sm:$0xff]  }
  0x49   : > { %271 = vadd.xlane.f32.xlu2 %v270_v5  ;;  %v785_v5 = vunpack.c.l.bf16 %v1033_v1 }
  0x4a   : > { %223 = vadd.xlane.f32.xlu1 %v222_v4  ;;  %v753_v4 = vunpack.c.l.bf16 %v836_v63 }
  0x4b   : > { %175 = vadd.xlane.f32.xlu0 %v174_v6  ;;  %v288_v17 = vsel %vm155_vm0, %v785_v5, 0.0 }
  0x4c   : > { %v240_v16 = vsel %vm155_vm0, %v753_v4, 0.0 }
  0x51   : > { %226 = vadd.xlane.f32.xlu2 %v225_v12 }
  0x52   : > { %178 = vadd.xlane.f32.xlu1 %v177_v11 }
  0x53   : > { %319 = vadd.xlane.f32.xlu0 %v318_v13 }
  0x59   : > { %181 = vadd.xlane.f32.xlu2 %v180_v19 }
  0x5a   : > { %322 = vadd.xlane.f32.xlu1 %v321_v18 }
  0x5b   : > { %274 = vadd.xlane.f32.xlu0 %v273_v20  ;;  %v192_v20 = vsel %vm155_vm0, %v721_v8, 0.0 }
  0x61   : > { %325 = vadd.xlane.f32.xlu2 %v324_v28 }
  0x62   : > { %277 = vadd.xlane.f32.xlu1 %v276_v27 }
  0x63   : > { %229 = vadd.xlane.f32.xlu0 %v228_v29 }
  0x69   : > { %280 = vadd.xlane.f32.xlu2 %v279_v34  ;;  %v243_v34 = vsel %vm155_vm0, %v754_v25, 0.0 }
  0x6a   : > { %232 = vadd.xlane.f32.xlu1 %v231_v33  ;;  %v195_v33 = vsel %vm155_vm0, %v722_v24, 0.0 }
  0x6b   : > { %184 = vadd.xlane.f32.xlu0 %v183_v35 }
  0x71   : > { %235 = vadd.xlane.f32.xlu2 %v234_v42 }
  0x72   : > { %187 = vadd.xlane.f32.xlu1 %v186_v41  ;;  %v786_v41 = vunpack.c.h.bf16 %v1033_v1 }
  0x73   : > { %328 = vadd.xlane.f32.xlu0 %v327_v43 }
  0x74   : > { %v291_v52 = vsel %vm155_vm0, %v786_v41, 0.0 }
  0x79   : > { %190 = vadd.xlane.f32.xlu2 %v189_v50 }
  0x7a   : > { %331 = vadd.xlane.f32.xlu1 %v330_v49  ;;  %v198_v49 = vsel %vm155_vm0, %v725_v40, 0.0 }
  0x7b   : > { %283 = vadd.xlane.f32.xlu0 %v282_v51 }
  0x7c   : > { %v254_v56 = vpop.xlane.xlu2 %253 }
  0x7d   : > { %v206_v57 = vpop.xlane.xlu1 %205  ;;  %v539_v6 = vperm.slane %v254_v56, %v1028_v61  ;;  %v837_v56 = vld [vmem:[%s955_s18 + $0x78] sm:$0xff]  }
  0x7e   : > { %v158_v58 = vpop.xlane.xlu0 %157  ;;  %v508_v7 = vperm.slane %v206_v57, %v1028_v61  ;;  %v456_v57 = vadd.s32 4294967272, %v1028_v61 }
  0x7f   : > { %v447_v14 = vperm.slane %v158_v58, %v1028_v61  ;;  %v789_v58 = vunpack.c.l.bf16 %v845_v53 }
  0x81   : > { %334 = vadd.xlane.f32.xlu2 %v333_v60  ;;  %v757_v60 = vunpack.c.l.bf16 %v837_v56  ;;  %v294_v5 = vsel %vm155_vm0, %v789_v58, 0.0  ;;  %v472_v58 = vadd.s32 4294967240, %v1028_v61 }
  0x82   : > { %286 = vadd.xlane.f32.xlu1 %v285_v59  ;;  %v821_v59 = vunpack.c.l.bf16 %v853_v54 }
  0x83   : > { %238 = vadd.xlane.f32.xlu0 %v237_v62 }
  0x84   : > { %v257_v9 = vpop.xlane.xlu2 %256 }
  0x85   : > { %v209_v10 = vpop.xlane.xlu1 %208  ;;  %v540_v11 = vperm.slane %v257_v9, %v448_v3  ;;  %v246_v9 = vsel %vm155_vm0, %v757_v60, 0.0 }
  0x86   : > { %v509_v12 = vperm.slane %v209_v10, %v448_v3  ;;  %v161_v13 = vpop.xlane.xlu0 %160 }
  0x87   : > { %v449_v15 = vperm.slane %v161_v13, %v448_v3  ;;  %v541_v18 = vsel %vm450_vm1, %v540_v11, %v539_v6  ;;  %v342_v6 = vsel %vm155_vm0, %v821_v59, 0.0  ;;  %v460_v11 = vadd.s32 4294967264, %v1028_v61 }
  0x88   : > { %v510_v19 = vsel %vm450_vm1, %v509_v12, %v508_v7  ;;  %v758_v12 = vunpack.c.h.bf16 %v837_v56  ;;  %v790_v13 = vunpack.c.h.bf16 %v845_v53 }
  0x89   : > { %v451_v21 = vsel %vm450_vm1, %v449_v15, %v447_v14  ;;  %289 = vadd.xlane.f32.xlu2 %v288_v17  ;;  %v726_v14 = vunpack.c.h.bf16 %v829_v37 }
  0x8a   : > { %241 = vadd.xlane.f32.xlu1 %v240_v16  ;;  %v297_v22 = vsel %vm155_vm0, %v790_v13, 0.0 }
  0x8b   : > { %193 = vadd.xlane.f32.xlu0 %v192_v20  ;;  %v201_v25 = vsel %vm155_vm0, %v726_v14, 0.0 }
  0x8c   : > { %v164_v28 = vpop.xlane.xlu2 %163 }
  0x8d   : > { %v305_v27 = vpop.xlane.xlu1 %304  ;;  %v453_v30 = vperm.slane %v164_v28, %v452_v23  ;;  %v822_v28 = vunpack.c.h.bf16 %v853_v54 }
  0x8e   : > { %v571_v29 = vperm.slane %v305_v27, %v448_v3  ;;  %v302_v31 = vpop.xlane.xlu0 %301  ;;  %v464_v27 = vadd.s32 4294967256, %v1028_v61 }
  0x8f   : > { %v570_v32 = vperm.slane %v302_v31, %v1028_v61  ;;  %v455_v35 = vsel %vm454_vm2, %v453_v30, %v451_v21  ;;  %v249_v21 = vsel %vm155_vm0, %v758_v12, 0.0  ;;  %v345_v37 = vsel %vm155_vm0, %v822_v28, 0.0 }
  0x90   : > { %vm601_vm0 = vcmask 1041409  }
  0x91   : > { %v572_v38 = vsel %vm450_vm1, %v571_v29, %v570_v32  ;;  %244 = vadd.xlane.f32.xlu2 %v243_v34  ;;  %vm652_vm1 = vcmask (%p17_p0), 1041408  }
  0x92   : > { %196 = vadd.xlane.f32.xlu1 %v195_v33 }
  0x93   : > { %337 = vadd.xlane.f32.xlu0 %v336_v36 }
  0x94   : > { %v308_v43 = vpop.xlane.xlu2 %307 }
  0x95   : > { %v260_v42 = vpop.xlane.xlu1 %259  ;;  %v573_v45 = vperm.slane %v308_v43, %v452_v23 }
  0x96   : > { %v542_v44 = vperm.slane %v260_v42, %v452_v23  ;;  %v212_v46 = vpop.xlane.xlu0 %211 }
  0x97   : > { %v511_v47 = vperm.slane %v212_v46, %v452_v23  ;;  %v574_v51 = vsel %vm454_vm2, %v573_v45, %v572_v38 }
  0x98   : > { %v543_v50 = vsel %vm454_vm2, %v542_v44, %v541_v18 }
  0x99   : > { %v512_v55 = vsel %vm454_vm2, %v511_v47, %v510_v19  ;;  %199 = vadd.xlane.f32.xlu2 %v198_v49 }
  0x9a   : > { %340 = vadd.xlane.f32.xlu1 %v339_v48  ;;  %v468_v48 = vadd.s32 4294967248, %v1028_v61 }
  0x9b   : > { %292 = vadd.xlane.f32.xlu0 %v291_v52 }
  0x9c   : > { %v263_v63 = vpop.xlane.xlu2 %262 }
  0x9d   : > { %v215_v62 = vpop.xlane.xlu1 %214  ;;  %v544_v2 = vperm.slane %v263_v63, %v456_v57 }
  0x9e   : > { %v513_v1 = vperm.slane %v215_v62, %v456_v57  ;;  %v167_v3 = vpop.xlane.xlu0 %166 }
  0x9f   : > { %v457_v4 = vperm.slane %v167_v3, %v456_v57  ;;  %v545_v8 = vsel %vm458_vm3, %v544_v2, %v543_v50 }
  0xa0   : > { %v514_v7 = vsel %vm458_vm3, %v513_v1, %v512_v55 }
  0xa1   : > { %v459_v10 = vsel %vm458_vm3, %v457_v4, %v455_v35  ;;  %343 = vadd.xlane.f32.xlu2 %v342_v6  ;;  %v1097_v6 = vadd.s32 4294967232, %v1028_v61 }
  0xa2   : > { %295 = vadd.xlane.f32.xlu1 %v294_v5 }
  0xa3   : > { %247 = vadd.xlane.f32.xlu0 %v246_v9 }
  0xa4   : > { %v218_v16 = vpop.xlane.xlu2 %217 }
  0xa5   : > { %v170_v15 = vpop.xlane.xlu1 %169  ;;  %v515_v18 = vperm.slane %v218_v16, %v460_v11 }
  0xa6   : > { %v461_v17 = vperm.slane %v170_v15, %v460_v11  ;;  %v311_v19 = vpop.xlane.xlu0 %310 }
  0xa7   : > { %v575_v20 = vperm.slane %v311_v19, %v456_v57  ;;  %v516_v24 = vsel %vm462_vm4, %v515_v18, %v514_v7 }
  0xa8   : > { %v463_v23 = vsel %vm462_vm4, %v461_v17, %v459_v10 }
  0xa9   : > { %v576_v26 = vsel %vm458_vm3, %v575_v20, %v574_v51  ;;  %298 = vadd.xlane.f32.xlu2 %v297_v22 }
  0xaa   : > { %250 = vadd.xlane.f32.xlu1 %v249_v21 }
  0xab   : > { %202 = vadd.xlane.f32.xlu0 %v201_v25 }
  0xac   : > { %v173_v30 = vpop.xlane.xlu2 %172 }
  0xad   : > { %v314_v29 = vpop.xlane.xlu1 %313  ;;  %v465_v32 = vperm.slane %v173_v30, %v464_v27 }
  0xae   : > { %v577_v31 = vperm.slane %v314_v29, %v460_v11  ;;  %v266_v33 = vpop.xlane.xlu0 %265 }
  0xaf   : > { %v546_v34 = vperm.slane %v266_v33, %v460_v11  ;;  %v467_v36 = vsel %vm466_vm5, %v465_v32, %v463_v23  ;;  %v361_v32 = vld [vmem:[%s1128_s21 + $0x60] sm:$0xff]  ;;  %v360_v33 = vld [vmem:[%s1128_s21 + $0x58] sm:$0xff] }
  0xb0   : > { %v578_v35 = vsel %vm462_vm4, %v577_v31, %v576_v26  ;;  %v364_v26 = vld [vmem:[%s1128_s21 + $0x78] sm:$0xff]  ;;  %v362_v31 = vld [vmem:[%s1128_s21 + $0x68] sm:$0xff] }
  0xb1   : > { %v547_v38 = vsel %vm462_vm4, %v546_v34, %v545_v8  ;;  %606 = vmatpush.msra.mxu0 %v364_v26  ;;  %v380_v34 = vld [vmem:[%s1128_s21 + $0xf8] sm:$0xff]  ;;  %v1201_v26 = vadd.s32 4294967208, %v1028_v61 }
  0xb2   : > { %626 = vmatpush.msra.mxu1 %v380_v34  ;;  %v1217_v34 = vadd.s32 4294967192, %v1028_v61 }
  0xb3   : > { %346 = vadd.xlane.f32.xlu0 %v345_v37 }
  0xb4   : > { %v317_v40 = vpop.xlane.xlu2 %316 }
  0xb5   : > { %v269_v39 = vpop.xlane.xlu1 %268  ;;  %v579_v42 = vperm.slane %v317_v40, %v464_v27  ;;  %v358_v40 = vld [vmem:[%s1128_s21 + $0x48] sm:$0xff] }
  0xb6   : > { %v548_v41 = vperm.slane %v269_v39, %v464_v27  ;;  %v221_v43 = vpop.xlane.xlu0 %220 }
  0xb7   : > { %v517_v44 = vperm.slane %v221_v43, %v464_v27  ;;  %v580_v46 = vsel %vm466_vm5, %v579_v42, %v578_v35  ;;  %v363_v27 = vld [vmem:[%s1128_s21 + $0x70] sm:$0xff]  ;;  %v357_v42 = vld [vmem:[%s1128_s21 + $0x40] sm:$0xff] }
  0xb8   : > { %v549_v45 = vsel %vm466_vm5, %v548_v41, %v547_v38  ;;  %607 = vmatpush.msra.mxu0 %v363_v27  ;;  %v379_v35 = vld [vmem:[%s1128_s21 + $0xf0] sm:$0xff]  ;;  %v378_v41 = vld [vmem:[%s1128_s21 + $0xe8] sm:$0xff]  ;;  %v377_v43 = vld [vmem:[%s1128_s21 + $0xe0] sm:$0xff]  ;;  %v1204_v27 = vadd.s32 4294967200, %v1028_v61 }
  0xb9   : > { %v518_v47 = vsel %vm466_vm5, %v517_v44, %v516_v24  ;;  %627 = vmatpush.msra.mxu1 %v379_v35  ;;  %v356_v44 = vld [vmem:[%s1128_s21 + $0x38] sm:$0xff] }
  0xba   : > { %608 = vmatpush.msra.mxu0 %v362_v31 }
  0xbb   : > { %628 = vmatpush.msra.mxu1 %v378_v41 }
  0xbc   : > { %v272_v50 = vpop.xlane.xlu2 %271  ;;  %609 = vmatpush.msra.mxu0 %v361_v32 }
  0xbd   : > { %v224_v49 = vpop.xlane.xlu1 %223  ;;  %v550_v52 = vperm.slane %v272_v50, %v468_v48  ;;  %629 = vmatpush.msra.mxu1 %v377_v43 }
  0xbe   : > { %v519_v51 = vperm.slane %v224_v49, %v468_v48  ;;  %v176_v53 = vpop.xlane.xlu0 %175  ;;  %610 = vmatpush.msra.mxu0 %v360_v33 }
  0xbf   : > { %v469_v54 = vperm.slane %v176_v53, %v468_v48  ;;  %v551_v56 = vsel %vm470_vm6, %v550_v52, %v549_v45  ;;  %v376_v45 = vld [vmem:[%s1128_s21 + $0xd8] sm:$0xff]  ;;  %v374_v52 = vld [vmem:[%s1128_s21 + $0xc8] sm:$0xff]  ;;  %v353_v53 = vld [vmem:[%s1128_s21 + $0x20] sm:$0xff] }
  0xc0   : > { %v520_v55 = vsel %vm470_vm6, %v519_v51, %v518_v47  ;;  %v375_v47 = vld [vmem:[%s1128_s21 + $0xd0] sm:$0xff]  ;;  %630 = vmatpush.msra.mxu1 %v376_v45  ;;  %v354_v51 = vld [vmem:[%s1128_s21 + $0x28] sm:$0xff] }
  0xc1   : > { %v471_v57 = vsel %vm470_vm6, %v469_v54, %v467_v36  ;;  %v359_v36 = vld [vmem:[%s1128_s21 + $0x50] sm:$0xff]  ;;  %v373_v54 = vld [vmem:[%s1128_s21 + $0xc0] sm:$0xff] }
  0xc2   : > { %611 = vmatpush.msra.mxu0 %v359_v36  ;;  %631 = vmatpush.msra.mxu1 %v375_v47 }
  0xc4   : > { %v227_v60 = vpop.xlane.xlu2 %226  ;;  %612 = vmatpush.msra.mxu0 %v358_v40  ;;  %632 = vmatpush.msra.mxu1 %v374_v52  ;;  %v1226_v40 = vadd.s32 4294967184, %v1028_v61 }
  0xc5   : > { %v179_v59 = vpop.xlane.xlu1 %178  ;;  %v521_v63 = vperm.slane %v227_v60, %v472_v58 }
  0xc6   : > { %v473_v62 = vperm.slane %v179_v59, %v472_v58  ;;  %v320_v1 = vpop.xlane.xlu0 %319  ;;  %613 = vmatpush.msra.mxu0 %v357_v42  ;;  %633 = vmatpush.msra.mxu1 %v373_v54 }
  0xc7   : > { %v581_v2 = vperm.slane %v320_v1, %v468_v48  ;;  %v522_v4 = vsel %vm474_vm7, %v521_v63, %v520_v55  ;;  %v352_v55 = vld [vmem:[%s1128_s21 + $0x18] sm:$0xff]  ;;  %v350_v63 = vld [vmem:[%s1128_s21 + $0x8] sm:$0xff] }
  0xc8   : > { %v475_v3 = vsel %vm474_vm7, %v473_v62, %v471_v57  ;;  %614 = vmatpush.msra.mxu0 %v356_v44  ;;  %v351_v57 = vld [vmem:[%s1128_s21 + $0x10] sm:$0xff]  ;;  %v370_v1 = vld [vmem:[%s1128_s21 + $0xa8] sm:$0xff]  ;;  %v504_v44 = vadd.s32 4294967176, %v1028_v61 }
  0xc9   : > { %v582_v5 = vsel %vm470_vm6, %v581_v2, %v580_v46  ;;  %v355_v46 = vld [vmem:[%s1128_s21 + $0x30] sm:$0xff]  ;;  %v349_v2 = vld [vmem:[%s1128_s21] sm:$0xff] }
  0xca   : > { %615 = vmatpush.msra.mxu0 %v355_v46 }
  0xcc   : > { %v182_v8 = vpop.xlane.xlu2 %181  ;;  %616 = vmatpush.msra.mxu0 %v354_v51 }
  0xcd   : > { %v323_v7 = vpop.xlane.xlu1 %322  ;;  %v477_v10 = vperm.slane %v182_v8, %v1097_v6 }
  0xce   : > { %v583_v9 = vperm.slane %v323_v7, %v472_v58  ;;  %v275_v11 = vpop.xlane.xlu0 %274  ;;  %617 = vmatpush.msra.mxu0 %v353_v53 }
  0xcf   : > { %v552_v12 = vperm.slane %v275_v11, %v472_v58  ;;  %v1102_v14 = vsel %vm478_vm8, %v477_v10, %v475_v3  ;;  %v371_v58 = vld [vmem:[%s1128_s21 + $0xb0] sm:$0xff]  ;;  %v369_v3 = vld [vmem:[%s1128_s21 + $0xa0] sm:$0xff]  ;;  %v366_v10 = vld [vmem:[%s1128_s21 + $0x88] sm:$0xff] }
  0xd0   : > { %v584_v13 = vsel %vm474_vm7, %v583_v9, %v582_v5  ;;  %618 = vmatpush.msra.mxu0 %v352_v55  ;;  %v367_v5 = vld [vmem:[%s1128_s21 + $0x90] sm:$0xff]  ;;  %v365_v11 = vld [vmem:[%s1128_s21 + $0x80] sm:$0xff] }
  0xd1   : > { %v1105_v15 = vsel %vm474_vm7, %v552_v12, %v551_v56  ;;  %v372_v56 = vld [vmem:[%s1128_s21 + $0xb8] sm:$0xff] }
  0xd2   : > { %634 = vmatpush.msra.mxu1 %v372_v56  ;;  %619 = vmatpush.msra.mxu0 %v351_v57 }
  0xd4   : > { %v326_v17 = vpop.xlane.xlu2 %325  ;;  %635 = vmatpush.msra.mxu1 %v371_v58  ;;  %620 = vmatpush.msra.mxu0 %v350_v63 }
  0xd5   : > { %v1107_v16 = vpop.xlane.xlu1 %277  ;;  %v585_v18 = vperm.slane %v326_v17, %v1097_v6 }
  0xd6   : > { %v230_v19 = vpop.xlane.xlu0 %229  ;;  %636 = vmatpush.msra.mxu1 %v370_v1  ;;  %621 = vmatpush.msra.mxu0 %v349_v2 }
  0xd7   : > { %v523_v20 = vperm.slane %v230_v19, %v1097_v6  ;;  %v1112_v21 = vsel %vm478_vm8, %v585_v18, %v584_v13  ;;  %v1193_v18 = vadd.s32 4294967224, %v1028_v61  ;;  %v554_v19 = vperm.slane %v1107_v16, %v1097_v6 }
  0xd8   : > { %637 = vmatpush.msra.mxu1 %v369_v3 }
  0xd9   : > { %v1115_v22 = vsel %vm478_vm8, %v523_v20, %v522_v4  ;;  %v368_v4 = vld [vmem:[%s1128_s21 + $0x98] sm:$0xff]  ;;  %v1198_v20 = vadd.s32 4294967216, %v1028_v61  ;;  %v555_v35 = vsel %vm478_vm8, %v554_v19, %v1105_v15 }
  0xda   : > { %638 = vmatpush.msra.mxu1 %v368_v4 }
  0xdc   : > { %v1119_v24 = vpop.xlane.xlu2 %280  ;;  %639 = vmatpush.msra.mxu1 %v367_v5 }
  0xdd   : > { %v1117_v23 = vpop.xlane.xlu1 %232  ;;  %v556_v32 = vperm.slane %v1119_v24, %v1193_v18 }
  0xde   : > { %v1121_v25 = vpop.xlane.xlu0 %184  ;;  %640 = vmatpush.msra.mxu1 %v366_v10  ;;  %v525_v41 = vperm.slane %v1117_v23, %v1193_v18 }
  0xdf   : > { %v481_v6 = vperm.slane %v1121_v25, %v1193_v18  ;;  %v557_v42 = vsel %vm482_vm9, %v556_v32, %v555_v35 }
  0xe0   : > { %641 = vmatpush.msra.mxu1 %v365_v11  ;;  %v526_v11 = vsel %vm482_vm9, %v525_v41, %v1115_v22 }
  0xe1   : > { %v483_v45 = vsel %vm482_vm9, %v481_v6, %v1102_v14 }
  0xe4   : > { %v1134_v29 = vpop.xlane.xlu2 %235 }
  0xe5   : > { %v1132_v28 = vpop.xlane.xlu1 %187  ;;  %v527_v63 = vperm.slane %v1134_v29, %v1198_v20 }
  0xe6   : > { %v1136_v30 = vpop.xlane.xlu0 %328  ;;  %v485_v36 = vperm.slane %v1132_v28, %v1198_v20 }
  0xe7   : > { %v587_v14 = vperm.slane %v1136_v30, %v1193_v18 }
  0xe8   : > { %v487_v47 = vsel %vm486_vm10, %v485_v36, %v483_v45 }
  0xec   : > { %v1146_v38 = vpop.xlane.xlu2 %190 }
  0xed   : > { %v1144_v37 = vpop.xlane.xlu1 %331 }
  0xee   : > { %v1148_v39 = vpop.xlane.xlu0 %283  ;;  %v589_v1 = vperm.slane %v1144_v37, %v1198_v20 }
  0xef   : > { %v558_v16 = vperm.slane %v1148_v39, %v1198_v20  ;;  %v489_v39 = vperm.slane %v1146_v38, %v1201_v26 }
  0xf1   : > { %v559_v23 = vsel %vm486_vm10, %v558_v16, %v557_v42  ;;  %v491_v52 = vsel %vm490_vm11, %v489_v39, %v487_v47 }
  0xf4   : > { %v1160_v49 = vpop.xlane.xlu2 %334 }
  0xf5   : > { %v1158_v48 = vpop.xlane.xlu1 %286  ;;  %v591_v3 = vperm.slane %v1160_v49, %v1201_v26  ;;  %v588_v49 = vsel %vm482_vm9, %v587_v14, %v1112_v21 }
  0xf6   : > { %v1162_v50 = vpop.xlane.xlu0 %238  ;;  %v560_v24 = vperm.slane %v1158_v48, %v1201_v26 }
  0xf7   : > { %v529_v4 = vperm.slane %v1162_v50, %v1201_v26 }
  0xf8   : > { %v561_v48 = vsel %vm490_vm11, %v560_v24, %v559_v23 }
  0xfc   : > { %v1174_v60 = vpop.xlane.xlu2 %289 }
  0xfd   : > { %v1172_v59 = vpop.xlane.xlu1 %241  ;;  %v562_v15 = vperm.slane %v1174_v60, %v1204_v27 }
  0xfe   : > { %v1176_v62 = vpop.xlane.xlu0 %193 }
  0xff   : > { %v493_v28 = vperm.slane %v1176_v62, %v1204_v27  ;;  %v563_v61 = vsel %vm494_vm12, %v562_v15, %v561_v48 }
 0x101   : > { %v495_v54 = vsel %vm494_vm12, %v493_v28, %v491_v52 }
 0x104   : > { %v1184_v8 = vpop.xlane.xlu2 %244 }
 0x105   : > { %v197_v7 = vpop.xlane.xlu1 %196  ;;  %v533_v50 = vperm.slane %v1184_v8, %v1217_v34 }
 0x106   : > { %v1186_v9 = vpop.xlane.xlu0 %337  ;;  %v497_v38 = vperm.slane %v197_v7, %v1217_v34  ;;  %v531_v7 = vperm.slane %v1172_v59, %v1204_v27  ;;  %v528_v59 = vsel %vm486_vm10, %v527_v63, %v526_v11 }
 0x107   : > { %v593_v29 = vperm.slane %v1186_v9, %v1204_v27  ;;  %v590_v9 = vsel %vm486_vm10, %v589_v1, %v588_v49  ;;  %v530_v21 = vsel %vm490_vm11, %v529_v4, %v528_v59 }
 0x108   : > { %v499_v58 = vsel %vm498_vm13, %v497_v38, %v495_v54  ;;  %v592_v18 = vsel %vm490_vm11, %v591_v3, %v590_v9  ;;  %v532_v8 = vsel %vm494_vm12, %v531_v7, %v530_v21 }
 0x109   : > { %v534_v26 = vsel %vm498_vm13, %v533_v50, %v532_v8 }
 0x10c   : > { %v200_v12 = vpop.xlane.xlu2 %199 }
 0x10d   : > { %v1190_v13 = vpop.xlane.xlu1 %340  ;;  %v501_v51 = vperm.slane %v200_v12, %v1226_v40 }
 0x10e   : > { %v293_v17 = vpop.xlane.xlu0 %292  ;;  %v595_v12 = vperm.slane %v1190_v13, %v1217_v34  ;;  %v594_v13 = vsel %vm494_vm12, %v593_v29, %v592_v18 }
 0x10f   : > { %v564_v43 = vperm.slane %v293_v17, %v1217_v34  ;;  %v503_v30 = vsel %vm502_vm14, %v501_v51, %v499_v58 }
 0x110   : > { %v596_v27 = vsel %vm498_vm13, %v595_v12, %v594_v13 }
 0x111   : > { %v565_v55 = vsel %vm498_vm13, %v564_v43, %v563_v61 }
 0x114   : > { %v1206_v31 = vpop.xlane.xlu2 %343 }
 0x115   : > { %v296_v25 = vpop.xlane.xlu1 %295  ;;  %v597_v17 = vperm.slane %v1206_v31, %v1226_v40 }
 0x116   : > { %v1210_v33 = vpop.xlane.xlu0 %247  ;;  %v566_v46 = vperm.slane %v296_v25, %v1226_v40  ;;  %v871_v25 = vld [vmem:[%s1310_s2] ss:$0 sm:$0xff] (%p17_p0) }
 0x117   : > { %v535_v22 = vperm.slane %v1210_v33, %v1226_v40  ;;  %v598_v6 = vsel %vm502_vm14, %v597_v17, %v596_v27 }
 0x118   : > { %v567_v62 = vsel %vm502_vm14, %v566_v46, %v565_v55 }
 0x119   : > { %v536_v31 = vsel %vm502_vm14, %v535_v22, %v534_v26 }
 0x11c   : > { %v299_v53 = vpop.xlane.xlu2 %298 }
 0x11d   : > { %v568_v56 = vperm.slane %v299_v53, %v504_v44  ;;  %v251_v10 = vpop.xlane.xlu1 %250 }
 0x11e   : > { %v203_v57 = vpop.xlane.xlu0 %202  ;;  %v537_v19 = vperm.slane %v251_v10, %v504_v44 }
 0x11f   : > { %v505_v60 = vperm.slane %v203_v57, %v504_v44  ;;  %v569_v2 = vsel %vm506_vm15, %v568_v56, %v567_v62 }
 0x120   : > { %v538_v33 = vsel %vm506_vm15, %v537_v19, %v536_v31 }
 0x121   : > { %v507_v5 = vsel %vm506_vm15, %v505_v60, %v503_v30 }
 0x122   : > { %v602_v37 = vsel %vm601_vm0, %v569_v2, %v507_v5 }
 0x123   : > { %622 = vmatmul.f32.vlgmr.msra.gmra.mxu0 %v602_v37 }
 0x126   : > { %v347_v20 = vpop.xlane.xlu0 %346 }
 0x127   : > { %v599_v32 = vperm.slane %v347_v20, %v504_v44 }
 0x129   : > { %v600_v16 = vsel %vm506_vm15, %v599_v32, %v598_v6 }
 0x12a   : > { %v603_v34 = vsel %vm601_vm0, %v600_v16, %v538_v33 }
 0x12b   : > { %642 = vmatmul.f32.vlgmr.msra.gmra.mxu1 %v603_v34 }
 0x1a0   : > { %v623_v35 = vpop.f32.mrf.mxu0 }
 0x1a8   : > { %v643_v36 = vpop.f32.mrf.mxu1 }
 0x1a9   : > { %v644_v24 = vadd.f32 %v643_v36, %v623_v35  ;;  %19 = sbr.rel (!%p17_p0) target bundleno = 1 (0x1), region = 41 }
 0x1ab   : > { %v646_v40 = vadd.f32 %v912_v0, %v644_v24  }
 0x1ad   : > { %v1312_v0 = vmov %v646_v40  ;;  %v651_v41 = vadd.f32 (%p17_p0), %v871_v25, %v646_v40 }
 0x1af   :  { %v653_v39 = vsel %vm652_vm1, %v651_v41, -inf }
 0x1b0   :  { %654 = vmax.xlane.f32.xlu0 %v653_v39 }
 0x223   :  { %v655_v15 = vpop.xlane.xlu0 %654 }
 0x224   :  { %v656_v42 = vsub.f32 %v651_v41, %v655_v15 }
 0x226   :  { %v657_v28 = vmul.f32 1.442695, %v656_v42 }
 0x228   :  { %872 = vpow2.f32 %v657_v28 }
 0x22e   :  { %v873_v0 = vpop.eup %872 }
 0x22f   :  { %v659_v43 = vsel %vm652_vm1, %v873_v0, 0.0 }
 0x230   :  { %660 = vadd.xlane.f32.xlu0 %v659_v43 }
 0x2a3   :  { %v661_v44 = vpop.xlane.xlu0 %660 }
 0x2a4   :  { %874 = vrcp.f32 %v661_v44 }
 0x2aa   :  { %v875_v45 = vpop.eup %874 }
 0x2ab   :  { %v663_v23 = vmul.f32 %v875_v45, %v873_v0 }
 0x2ad   :  { %664 = vst [vmem:[#allocation2] sm:$0x3] %v663_v23 }
 0x2ae   :  { %675 = dma.vmem_to_hbm [thread:$0]  %s671_s25, 32, %s673_s1, [#allocation3]  }
 0x2af   :  { %908 = dma.done.wait [#allocation3], 32  }
 0x2b0   :  { %909 = vsyncadd [#allocation3], 4294967264 }
 0x2b1   :  { %680 = vsyncpa [#allocation3], 1 }

</bundles_post_ra>
